<compile_context>
chip_gen: v6e
topology: v6e:2x2x1
jax: 0.10.0
libtpu: 0.0.40
codegen_flags: <defaults>
</compile_context>

<pallas_src>
import jax
import jax.numpy as jnp
import numpy as np
from jax import lax
from jax.experimental import pallas as pl
from jax.experimental.pallas import tpu as pltpu


def _m_kernel(seed_ref, o_ref):
    # splitmix32-style hash of the seed: pure scalar-ALU (SMEM) work.
    # Constants are Python int literals (signed int32 representation), so
    # nothing is captured from the enclosing module scope.
    z = seed_ref[0] + (-1640531527)                                    # 0x9E3779B9
    z = (z ^ lax.shift_right_logical(z, np.int32(16))) * (-2048144789)  # 0x85EBCA6B
    z = (z ^ lax.shift_right_logical(z, np.int32(13))) * (-1028477387)  # 0xC2B2AE35
    z = z ^ lax.shift_right_logical(z, np.int32(16))

    # Keep 24 random bits -> uniform [0, 1) float32, written as one scalar.
    r24 = z & 0x00FFFFFF
    o_ref[0] = r24.astype(jnp.float32) * (1.0 / (1 << 24))


@jax.jit
def _m_pallas(seed_arr):
    # Single scalar in (SMEM) -> single scalar out (SMEM); no grid, no VMEM.
    return pl.pallas_call(
        _m_kernel,
        out_shape=jax.ShapeDtypeStruct((1,), jnp.float32),
        in_specs=[pl.BlockSpec(memory_space=pltpu.MemorySpace.SMEM)],
        out_specs=pl.BlockSpec(memory_space=pltpu.MemorySpace.SMEM),
    )(seed_arr)


def m_forward(x1, seed: int = 0):
    """Forward pass of module `m`. x1 is unused (as in the PyTorch module)."""
    del x1
    seed_arr = jnp.asarray([seed], dtype=jnp.int32)
    # Logical result of rand_like(x5): shape (1,), float32, uniform [0, 1).
    return _m_pallas(seed_arr)


if __name__ == "__main__":
    key = jax.random.PRNGKey(0)
    # x1 matches the PyTorch example input shape (1, 1, 2); it is unused.
    x1 = jax.random.normal(key, (1, 1, 2), dtype=jnp.float32)

    result = m_forward(x1, seed=0)
    result = jax.block_until_ready(result)

    assert result.shape == (1,)
    assert result.dtype == jnp.float32
    # rand_like produces values in [0, 1)
    assert bool(jnp.all((result >= 0.0) & (result < 1.0)))

    print("KERNEL_OK")
</pallas_src>

<mosaic_0001>
module attributes {stable_mosaic.version = 11 : i64} {
  func.func @_m_kernel(%arg0: memref<1xi32, #tpu.memory_space<smem>>, %arg1: memref<1xf32, #tpu.memory_space<smem>>) attributes {dimension_semantics = [], scalar_prefetch = 0 : i64, scratch_operands = 0 : i64, tpu.core_type = #tpu.core_type<tc>} {
    %c0 = arith.constant 0 : index
    %0 = memref.load %arg0[%c0] : memref<1xi32, #tpu.memory_space<smem>>
    %c-1640531527_i32 = arith.constant -1640531527 : i32
    %1 = arith.addi %0, %c-1640531527_i32 : i32
    %c16_i32 = arith.constant 16 : i32
    %2 = arith.shrui %1, %c16_i32 : i32
    %3 = arith.xori %1, %2 : i32
    %c-2048144789_i32 = arith.constant -2048144789 : i32
    %4 = arith.muli %3, %c-2048144789_i32 : i32
    %c13_i32 = arith.constant 13 : i32
    %5 = arith.shrui %4, %c13_i32 : i32
    %6 = arith.xori %4, %5 : i32
    %c-1028477387_i32 = arith.constant -1028477387 : i32
    %7 = arith.muli %6, %c-1028477387_i32 : i32
    %c16_i32_0 = arith.constant 16 : i32
    %8 = arith.shrui %7, %c16_i32_0 : i32
    %9 = arith.xori %7, %8 : i32
    %c16777215_i32 = arith.constant 16777215 : i32
    %10 = arith.andi %9, %c16777215_i32 : i32
    %11 = arith.sitofp %10 : i32 to f32
    %cst = arith.constant 5.96046448E-8 : f32
    %12 = arith.mulf %11, %cst : f32
    %c0_1 = arith.constant 0 : index
    %13 = memref.load %arg1[%c0_1] : memref<1xf32, #tpu.memory_space<smem>>
    memref.store %12, %arg1[%c0_1] : memref<1xf32, #tpu.memory_space<smem>>
    return
  }
}

</mosaic_0001>

<bundles_post_ra>
// kernel: _m_pallas.1
= control target key start
LH: loop header
LB: loop body
LE: loop exit
PB: predicated region body
PF: predicated region fallthrough
CT: control target
= control target key end

     0   :  { %7 = vsyncpa [#allocation4], 0  ;;  %s49_s20 = smov [#allocation3]   ;;  %s66_s0 = inlined_call_operand.<no memory space> [shape: s32[1], index: 0, kind: input, shape index: {}]   ;;  %s67_s1 = inlined_call_operand.hbm [shape: f32[1], index: 1, kind: output, shape index: {}]  }
   0x1   :  { %s11_s8 = sadd.s32 2654435769, %s66_s0 }
   0x2   :  { %s12_s9 = sshrl.u32 %s11_s8, 16 }
   0x3   :  { %s13_s10 = sxor.u32 %s12_s9, %s11_s8 }
   0x4   :  { %s14_s11 = smul.u32 2246822507, %s13_s10 }
   0x6   :  { %s15_s12 = sshrl.u32 %s14_s11, 13 }
   0x7   :  { %s16_s13 = sxor.u32 %s15_s12, %s14_s11 }
   0x8   :  { %s17_s14 = smul.u32 3266489909, %s16_s13 }
   0xa   :  { %s18_s15 = sshrl.u32 %s17_s14, 16 }
   0xb   :  { %s19_s16 = sxor.u32 %s18_s15, %s17_s14 }
   0xc   :  { %s20_s17 = sand.u32 16777215, %s19_s16 }
   0xd   :  { %s21_s18 = scvt.s32.f32 %s20_s17 }
   0xf   :  { %s22_s19 = smul.f32 5.9604645e-08, %s21_s18 }
  0x11   :  { %24 = sst [smem:[#allocation3]] %s22_s19 }
  0x12   :  { %32 = dma.smem_to_hbm %s49_s20, 16, %s67_s1, [#allocation4]  }
  0x13   :  { %47 = dma.done.wait [#allocation4], 16  }
  0x14   :  { %48 = vsyncadd [#allocation4], 4294967280 }
  0x15   :  { %36 = sfence }
  0x16   :  { %37 = vsyncpa [#allocation4], 1 }

</bundles_post_ra>
